<compile_context>
chip_gen: v7x
topology: tpu7x:2x2x1
jax: 0.10.0
libtpu: 0.0.40
codegen_flags: <defaults>
</compile_context>

<pallas_src>
import functools

import jax
import jax.numpy as jnp
from jax.experimental import pallas as pl
from jax.experimental.pallas import tpu as pltpu


def _round_up(x, m):
    return ((x + m - 1) // m) * m


# ----------------------------------------------------------------------------
# Fused kernel: in_scalar_net -> fused(out_vector_net | out_scalar_net)
# ----------------------------------------------------------------------------
def _equivariant_mlps_kernel(
    s0_ref,
    w1a_ref, b1a_ref, w1b_ref, b1b_ref,          # in_scalar_net (last_act=True)
    w23a_ref, b23a_ref, w23b_ref, b23b_ref,      # fused out_vector_net | out_scalar_net
    out_ref,                                     # packed [bb, out_p] output
    *, act: str):
    def actf(v):
        return jnp.tanh(v) if act == "tanh" else jnp.maximum(v, 0.0)

    def dot(a, b_ref):
        # Weights are pre-cast (bf16 by default) in HBM; only f32 activations get cast
        # here before hitting the MXU. Always accumulate in f32.
        b = b_ref[...]
        return jnp.dot(a.astype(b.dtype), b, preferred_element_type=jnp.float32)

    x = s0_ref[...]                                            # [bb, d_in] (compute dtype)

    # in_scalar_net: Linear -> act -> Linear -> act          (f32 activations)
    h1 = actf(dot(x, w1a_ref) + b1a_ref[...])                  # [bb, h_p]
    s1 = actf(dot(h1, w1b_ref) + b1b_ref[...])                 # [bb, d_hid_p]

    # fused out_vector_net | out_scalar_net:
    #   one 256-wide first layer, one block-structured second layer, one packed output.
    h23 = actf(dot(s1, w23a_ref) + b23a_ref[...])              # [bb, 2*h_p]
    out = dot(h23, w23b_ref) + b23b_ref[...]                   # [bb, out_p]

    out_ref[...] = out.astype(out_ref.dtype)


# ----------------------------------------------------------------------------
# Wrapper: full EquivariantScalarNet forward
# ----------------------------------------------------------------------------
def equivariant_scalar_net_forward(Z, params, scalars=None, *, norm=True, act="tanh",
                                   block_b=4096, compute_dtype=jnp.bfloat16,
                                   out_dtype=None,
                                   vmem_budget_bytes=24 * 1024 * 1024):
    """Z: [N, 3, K] -> (vector [N, 3], scalar [N, hidden_dim])."""
    N, three, K = Z.shape
    assert three == 3
    out_dtype = Z.dtype if out_dtype is None else out_dtype

    # --- O(n)-invariant scalars: gram = Z^T Z, flatten, L2-normalize, cat extra scalars ---
    # (dim-3 contraction + normalize are tiny and not lane-friendly; stay in XLA)
    gram = jnp.einsum('bji,bjk->bik', Z, Z).reshape(N, K * K)
    if norm:
        gram = gram / jnp.maximum(
            jnp.linalg.norm(gram, axis=-1, keepdims=True), 1e-12)   # F.normalize(p=2)
    s0 = gram if scalars is None else jnp.concatenate([gram, scalars], axis=-1)
    d_in = s0.shape[-1]

    p = params
    h_mlp = p['in_scalar']['w1'].shape[1]      # 4*hidden_dim (flat=True)
    d_hid = p['in_scalar']['w2'].shape[1]      # hidden_dim
    assert p['out_vector']['w2'].shape[1] == K

    # --- lane-dense padding of internal widths only (input width d_in left natural) ---
    h_p = _round_up(h_mlp, 128)
    d_hid_p = _round_up(d_hid, 128)
    out_dim = K + d_hid                         # packed: [vec_scalar | scalar]
    out_p = _round_up(out_dim, 128)

    w_isz = jnp.dtype(compute_dtype).itemsize
    o_isz = jnp.dtype(out_dtype).itemsize

    def _tile_vmem_bytes(bb):
        io = 2 * bb * d_in * w_isz + 2 * bb * out_p * o_isz          # double-buffered tiles
        inter = bb * (h_p + d_hid_p + 2 * h_p + out_p) * 4            # f32 intermediates
        inter += bb * (d_hid_p + 2 * h_p) * w_isz                     # casted MXU operands
        wts = 2 * w_isz * (d_in * h_p + h_p * d_hid_p
                           + d_hid_p * 2 * h_p + 2 * h_p * out_p)
        bias = 2 * 4 * (h_p + d_hid_p + 2 * h_p + out_p)
        return io + inter + wts + bias

    # --- batch tile: large (amortize per-step overhead), multiple of 8, >=2 grid steps so
    #     both v7x TensorCores get work, and within the (v7x-safe) VMEM budget ---
    bb = min(block_b, max(8, _round_up(pl.cdiv(max(N, 1), 4), 8)))
    bb = _round_up(bb, 8)
    while bb > 8 and _tile_vmem_bytes(bb) > vmem_budget_bytes:
        bb = max(8, _round_up(bb // 2, 8))
    n_pad = _round_up(max(N, 1), bb)            # ragged N handled by zero padding
    grid = (n_pad // bb,)

    # --- pad / fuse parameters (zero padding keeps the math exact) ---
    f32 = jnp.float32

    def pw(w, rp, cp):
        return jnp.pad(w.astype(f32), ((0, rp - w.shape[0]), (0, cp - w.shape[1])))

    def pb(b, cp):
        return jnp.pad(b.astype(f32).reshape(1, -1), ((0, 0), (0, cp - b.shape[0])))

    w1a = pw(p['in_scalar']['w1'], d_in, h_p)
    b1a = pb(p['in_scalar']['b1'], h_p)
    w1b = pw(p['in_scalar']['w2'], h_p, d_hid_p)
    b1b = pb(p['in_scalar']['b2'], d_hid_p)

    # Fused out_vector_net | out_scalar_net:
    #   first layers concatenated along the output dim -> [d_hid_p, 2*h_p]
    #   second layers placed block-diagonally           -> [2*h_p, out_p]
    w23a = jnp.concatenate([pw(p['out_vector']['w1'], d_hid_p, h_p),
                            pw(p['out_scalar']['w1'], d_hid_p, h_p)], axis=1)
    b23a = jnp.concatenate([pb(p['out_vector']['b1'], h_p),
                            pb(p['out_scalar']['b1'], h_p)], axis=1)
    w23b = jnp.zeros((2 * h_p, out_p), f32)
    w23b = w23b.at[:h_mlp, :K].set(p['out_vector']['w2'].astype(f32))
    w23b = w23b.at[h_p:h_p + h_mlp, K:K + d_hid].set(p['out_scalar']['w2'].astype(f32))
    b23b = jnp.zeros((1, out_p), f32)
    b23b = b23b.at[0, :K].set(p['out_vector']['b2'].astype(f32))
    b23b = b23b.at[0, K:K + d_hid].set(p['out_scalar']['b2'].astype(f32))

    # Pre-cast matmul operands to the MXU compute dtype (bf16 default on v5e/v6e/v7x);
    # biases stay f32 (added to f32 accumulator), activations stay f32 in-kernel.
    w1a, w1b, w23a, w23b = (w.astype(compute_dtype) for w in (w1a, w1b, w23a, w23b))
    s0_p = jnp.pad(s0, ((0, n_pad - N), (0, 0))).astype(compute_dtype)

    # --- cost hint for XLA's scheduler ---
    flops = 2 * n_pad * (d_in * h_p + h_p * d_hid_p
                         + d_hid_p * 2 * h_p + 2 * h_p * out_p)
    transcendentals = n_pad * (h_p + d_hid_p + 2 * h_p)
    bytes_accessed = (n_pad * (d_in * w_isz + out_p * o_isz)
                      + w_isz * (d_in * h_p + h_p * d_hid_p
                                 + d_hid_p * 2 * h_p + 2 * h_p * out_p)
                      + 4 * (h_p + d_hid_p + 2 * h_p + out_p))

    kernel = functools.partial(_equivariant_mlps_kernel, act=act)

    resident = lambda i: (0, 0)   # constant index_map: weights stay resident across steps
    x_map = lambda i: (i, 0)

    out_packed = pl.pallas_call(
        kernel,
        out_shape=jax.ShapeDtypeStruct((n_pad, out_p), out_dtype),
        grid_spec=pltpu.PrefetchScalarGridSpec(
            num_scalar_prefetch=0,
            grid=grid,
            in_specs=[
                pl.BlockSpec((bb, d_in), x_map),             # scalar-feature tile (narrow DMA)
                pl.BlockSpec((d_in, h_p), resident),          # W1a
                pl.BlockSpec((1, h_p), resident),             # b1a
                pl.BlockSpec((h_p, d_hid_p), resident),       # W1b
                pl.BlockSpec((1, d_hid_p), resident),         # b1b
                pl.BlockSpec((d_hid_p, 2 * h_p), resident),   # W2a|W3a fused
                pl.BlockSpec((1, 2 * h_p), resident),         # b2a|b3a fused
                pl.BlockSpec((2 * h_p, out_p), resident),     # W2b/W3b block-structured
                pl.BlockSpec((1, out_p), resident),           # b2b|b3b packed
            ],
            out_specs=pl.BlockSpec((bb, out_p), x_map),       # single packed lane-dense out
        ),
        compiler_params=pltpu.CompilerParams(
            dimension_semantics=("parallel",),
            vmem_limit_bytes=min(int(1.5 * vmem_budget_bytes), 40 * 1024 * 1024),
        ),
        cost_estimate=pl.CostEstimate(flops=flops, transcendentals=transcendentals,
                                      bytes_accessed=bytes_accessed),
    )(s0_p, w1a, b1a, w1b, b1b, w23a, b23a, w23b, b23b)

    vec_scalar = out_packed[:N, :K].astype(Z.dtype)
    scalar_out = out_packed[:N, K:K + d_hid].astype(Z.dtype)
    # Equivariant combination of the input vectors; [N,3] output is too narrow for lanes,
    # so this tiny contraction stays in XLA.
    vector = jnp.einsum('bij,bj->bi', Z, vec_scalar)
    return vector, scalar_out


# ----------------------------------------------------------------------------
# Parameter init (matches nn.Linear U(-1/sqrt(fan_in), 1/sqrt(fan_in)); weights [in, out])
# ----------------------------------------------------------------------------
def init_base_mlp(key, input_dim, hidden_dim, output_dim, flat=True, dtype=jnp.float32):
    if flat:
        hidden_dim = 4 * hidden_dim
    k1, k2, k3, k4 = jax.random.split(key, 4)
    b_in = 1.0 / (input_dim ** 0.5)
    b_h = 1.0 / (hidden_dim ** 0.5)
    return dict(
        w1=jax.random.uniform(k1, (input_dim, hidden_dim), dtype, -b_in, b_in),
        b1=jax.random.uniform(k2, (hidden_dim,), dtype, -b_in, b_in),
        w2=jax.random.uniform(k3, (hidden_dim, output_dim), dtype, -b_h, b_h),
        b2=jax.random.uniform(k4, (output_dim,), dtype, -b_h, b_h),
    )


def init_equivariant_scalar_net(key, n_vector_input, hidden_dim, n_scalar_input=0, flat=True):
    input_dim = n_vector_input * n_vector_input + n_scalar_input
    k1, k2, k3 = jax.random.split(key, 3)
    return dict(
        in_scalar=init_base_mlp(k1, input_dim, hidden_dim, hidden_dim, flat),
        out_vector=init_base_mlp(k2, hidden_dim, hidden_dim, n_vector_input, flat),
        out_scalar=init_base_mlp(k3, hidden_dim, hidden_dim, hidden_dim, flat),
    )


# ----------------------------------------------------------------------------
# Pure-JAX reference (mirrors the PyTorch forward)
# ----------------------------------------------------------------------------
def _base_mlp_ref(x, mp, act, last_act):
    actf = jnp.tanh if act == "tanh" else (lambda v: jnp.maximum(v, 0.0))
    h = actf(x @ mp['w1'] + mp['b1'])
    out = h @ mp['w2'] + mp['b2']
    return actf(out) if last_act else out


def equivariant_scalar_net_reference(Z, params, scalars=None, norm=True, act="tanh"):
    N, _, K = Z.shape
    gram = jnp.einsum('bji,bjk->bik', Z, Z).reshape(N, K * K)
    if norm:
        gram = gram / jnp.maximum(jnp.linalg.norm(gram, axis=-1, keepdims=True), 1e-12)
    s = gram if scalars is None else jnp.concatenate([gram, scalars], axis=-1)
    s = _base_mlp_ref(s, params['in_scalar'], act, last_act=True)
    vs = _base_mlp_ref(s, params['out_vector'], act, last_act=False)
    vector = jnp.einsum('bij,bj->bi', Z, vs)
    scalar = _base_mlp_ref(s, params['out_scalar'], act, last_act=False)
    return vector, scalar


if __name__ == "__main__":
    # Small shapes consistent with the module: N samples of K vectors in R^3, hidden_dim=32.
    # flat=True (module default) => tanh activation, MLP hidden = 4*32 = 128 (lane-dense).
    N, K, hidden_dim = 16, 4, 32
    key = jax.random.PRNGKey(0)
    kz, kp = jax.random.split(key)

    Z = jax.random.normal(kz, (N, 3, K), jnp.float32)
    params = init_equivariant_scalar_net(kp, n_vector_input=K, hidden_dim=hidden_dim)

    vec_ref, sc_ref = equivariant_scalar_net_reference(Z, params)

    # Exact path (f32 MXU operands) — tight tolerance.
    v32, s32 = jax.block_until_ready(
        equivariant_scalar_net_forward(Z, params, compute_dtype=jnp.float32))
    assert v32.shape == (N, 3)
    assert s32.shape == (N, hidden_dim)
    assert jnp.allclose(v32, vec_ref, atol=1e-4, rtol=1e-4), "f32 vector mismatch"
    assert jnp.allclose(s32, sc_ref, atol=1e-4, rtol=1e-4), "f32 scalar mismatch"

    # Default fast path (bf16 MXU operands, f32 accumulate/activations) — loose tolerance.
    vbf, sbf = jax.block_until_ready(equivariant_scalar_net_forward(Z, params))
    assert vbf.shape == (N, 3)
    assert sbf.shape == (N, hidden_dim)
    assert jnp.allclose(vbf, vec_ref, atol=5e-2, rtol=5e-2), "bf16 vector mismatch"
    assert jnp.allclose(sbf, sc_ref, atol=5e-2, rtol=5e-2), "bf16 scalar mismatch"

    print("KERNEL_OK")
</pallas_src>

<mosaic_0001>
module attributes {stable_mosaic.version = 11 : i64} {
  func.func @_equivariant_mlps_kernel(%arg0: i32, %arg1: memref<8x16xf32, #tpu.memory_space<vmem>>, %arg2: memref<16x128xf32, #tpu.memory_space<vmem>>, %arg3: memref<1x128xf32, #tpu.memory_space<vmem>>, %arg4: memref<128x128xf32, #tpu.memory_space<vmem>>, %arg5: memref<1x128xf32, #tpu.memory_space<vmem>>, %arg6: memref<128x256xf32, #tpu.memory_space<vmem>>, %arg7: memref<1x256xf32, #tpu.memory_space<vmem>>, %arg8: memref<256x128xf32, #tpu.memory_space<vmem>>, %arg9: memref<1x128xf32, #tpu.memory_space<vmem>>, %arg10: memref<8x128xf32, #tpu.memory_space<vmem>>) attributes {dimension_semantics = [#tpu.dimension_semantics<parallel>], iteration_bounds = array<i64: 2>, scalar_prefetch = 0 : i64, scratch_operands = 0 : i64, tpu.core_type = #tpu.core_type<tc>, window_params = [{transform_indices = @transform_0, window_bounds = array<i64: 8, 16>}, {pipeline_mode = #tpu.pipeline_mode<synchronous>, transform_indices = @transform_1, window_bounds = array<i64: 16, 128>}, {pipeline_mode = #tpu.pipeline_mode<synchronous>, transform_indices = @transform_2, window_bounds = array<i64: 1, 128>}, {pipeline_mode = #tpu.pipeline_mode<synchronous>, transform_indices = @transform_3, window_bounds = array<i64: 128, 128>}, {pipeline_mode = #tpu.pipeline_mode<synchronous>, transform_indices = @transform_4, window_bounds = array<i64: 1, 128>}, {pipeline_mode = #tpu.pipeline_mode<synchronous>, transform_indices = @transform_5, window_bounds = array<i64: 128, 256>}, {pipeline_mode = #tpu.pipeline_mode<synchronous>, transform_indices = @transform_6, window_bounds = array<i64: 1, 256>}, {pipeline_mode = #tpu.pipeline_mode<synchronous>, transform_indices = @transform_7, window_bounds = array<i64: 256, 128>}, {pipeline_mode = #tpu.pipeline_mode<synchronous>, transform_indices = @transform_8, window_bounds = array<i64: 1, 128>}, {transform_indices = @transform_9, window_bounds = array<i64: 8, 128>}]} {
    %c0 = arith.constant 0 : index
    %c0_0 = arith.constant 0 : index
    %0 = vector.load %arg1[%c0, %c0_0] : memref<8x16xf32, #tpu.memory_space<vmem>>, vector<8x16xf32>
    %c0_1 = arith.constant 0 : index
    %c0_2 = arith.constant 0 : index
    %1 = vector.load %arg2[%c0_1, %c0_2] : memref<16x128xf32, #tpu.memory_space<vmem>>, vector<16x128xf32>
    %cst = arith.constant dense<0.000000e+00> : vector<8x128xf32>
    %2 = tpu.matmul %0, %1, %cst {dimension_numbers = #tpu.dot_dimension_numbers<[1], [0], [0], [1], [0, 0, 1, 1], [], []>} : vector<8x16xf32>, vector<16x128xf32>, vector<8x128xf32> -> vector<8x128xf32>
    %c0_3 = arith.constant 0 : index
    %c0_4 = arith.constant 0 : index
    %3 = vector.load %arg3[%c0_3, %c0_4] : memref<1x128xf32, #tpu.memory_space<vmem>>, vector<1x128xf32>
    %4 = vector.broadcast %3 : vector<1x128xf32> to vector<8x128xf32>
    %5 = arith.addf %2, %4 : vector<8x128xf32>
    %6 = math.tanh %5 : vector<8x128xf32>
    %c0_5 = arith.constant 0 : index
    %c0_6 = arith.constant 0 : index
    %7 = vector.load %arg4[%c0_5, %c0_6] : memref<128x128xf32, #tpu.memory_space<vmem>>, vector<128x128xf32>
    %cst_7 = arith.constant dense<0.000000e+00> : vector<8x128xf32>
    %8 = tpu.matmul %6, %7, %cst_7 {dimension_numbers = #tpu.dot_dimension_numbers<[1], [0], [0], [1], [0, 0, 1, 1], [], []>} : vector<8x128xf32>, vector<128x128xf32>, vector<8x128xf32> -> vector<8x128xf32>
    %c0_8 = arith.constant 0 : index
    %c0_9 = arith.constant 0 : index
    %9 = vector.load %arg5[%c0_8, %c0_9] : memref<1x128xf32, #tpu.memory_space<vmem>>, vector<1x128xf32>
    %10 = vector.broadcast %9 : vector<1x128xf32> to vector<8x128xf32>
    %11 = arith.addf %8, %10 : vector<8x128xf32>
    %12 = math.tanh %11 : vector<8x128xf32>
    %c0_10 = arith.constant 0 : index
    %c0_11 = arith.constant 0 : index
    %13 = vector.load %arg6[%c0_10, %c0_11] : memref<128x256xf32, #tpu.memory_space<vmem>>, vector<128x256xf32>
    %cst_12 = arith.constant dense<0.000000e+00> : vector<8x256xf32>
    %14 = tpu.matmul %12, %13, %cst_12 {dimension_numbers = #tpu.dot_dimension_numbers<[1], [0], [0], [1], [0, 0, 1, 1], [], []>} : vector<8x128xf32>, vector<128x256xf32>, vector<8x256xf32> -> vector<8x256xf32>
    %c0_13 = arith.constant 0 : index
    %c0_14 = arith.constant 0 : index
    %15 = vector.load %arg7[%c0_13, %c0_14] : memref<1x256xf32, #tpu.memory_space<vmem>>, vector<1x256xf32>
    %16 = vector.broadcast %15 : vector<1x256xf32> to vector<8x256xf32>
    %17 = arith.addf %14, %16 : vector<8x256xf32>
    %18 = math.tanh %17 : vector<8x256xf32>
    %c0_15 = arith.constant 0 : index
    %c0_16 = arith.constant 0 : index
    %19 = vector.load %arg8[%c0_15, %c0_16] : memref<256x128xf32, #tpu.memory_space<vmem>>, vector<256x128xf32>
    %cst_17 = arith.constant dense<0.000000e+00> : vector<8x128xf32>
    %20 = tpu.matmul %18, %19, %cst_17 {dimension_numbers = #tpu.dot_dimension_numbers<[1], [0], [0], [1], [0, 0, 1, 1], [], []>} : vector<8x256xf32>, vector<256x128xf32>, vector<8x128xf32> -> vector<8x128xf32>
    %c0_18 = arith.constant 0 : index
    %c0_19 = arith.constant 0 : index
    %21 = vector.load %arg9[%c0_18, %c0_19] : memref<1x128xf32, #tpu.memory_space<vmem>>, vector<1x128xf32>
    %22 = vector.broadcast %21 : vector<1x128xf32> to vector<8x128xf32>
    %23 = arith.addf %20, %22 : vector<8x128xf32>
    %c0_20 = arith.constant 0 : index
    %c0_21 = arith.constant 0 : index
    %24 = vector.load %arg10[%c0_20, %c0_21] : memref<8x128xf32, #tpu.memory_space<vmem>>, vector<8x128xf32>
    tpu.vector_store %arg10[%c0_20, %c0_21], %23 {strides = array<i32>} : memref<8x128xf32, #tpu.memory_space<vmem>>, vector<8x128xf32>,
    return
  }
  func.func @transform_0(%arg0: i32) -> (i32, i32) {
    %c0_i32 = arith.constant 0 : i32
    %c0_i32_0 = arith.constant 0 : i32
    return %arg0, %c0_i32 : i32, i32
  }
  func.func @transform_1(%arg0: i32) -> (i32, i32) {
    %c0_i32 = arith.constant 0 : i32
    %c0_i32_0 = arith.constant 0 : i32
    %c0_i32_1 = arith.constant 0 : i32
    return %c0_i32, %c0_i32_0 : i32, i32
  }
  func.func @transform_2(%arg0: i32) -> (i32, i32) {
    %c0_i32 = arith.constant 0 : i32
    %c0_i32_0 = arith.constant 0 : i32
    %c0_i32_1 = arith.constant 0 : i32
    return %c0_i32, %c0_i32_0 : i32, i32
  }
  func.func @transform_3(%arg0: i32) -> (i32, i32) {
    %c0_i32 = arith.constant 0 : i32
    %c0_i32_0 = arith.constant 0 : i32
    %c0_i32_1 = arith.constant 0 : i32
    return %c0_i32, %c0_i32_0 : i32, i32
  }
  func.func @transform_4(%arg0: i32) -> (i32, i32) {
    %c0_i32 = arith.constant 0 : i32
    %c0_i32_0 = arith.constant 0 : i32
    %c0_i32_1 = arith.constant 0 : i32
    return %c0_i32, %c0_i32_0 : i32, i32
  }
  func.func @transform_5(%arg0: i32) -> (i32, i32) {
    %c0_i32 = arith.constant 0 : i32
    %c0_i32_0 = arith.constant 0 : i32
    %c0_i32_1 = arith.constant 0 : i32
    return %c0_i32, %c0_i32_0 : i32, i32
  }
  func.func @transform_6(%arg0: i32) -> (i32, i32) {
    %c0_i32 = arith.constant 0 : i32
    %c0_i32_0 = arith.constant 0 : i32
    %c0_i32_1 = arith.constant 0 : i32
    return %c0_i32, %c0_i32_0 : i32, i32
  }
  func.func @transform_7(%arg0: i32) -> (i32, i32) {
    %c0_i32 = arith.constant 0 : i32
    %c0_i32_0 = arith.constant 0 : i32
    %c0_i32_1 = arith.constant 0 : i32
    return %c0_i32, %c0_i32_0 : i32, i32
  }
  func.func @transform_8(%arg0: i32) -> (i32, i32) {
    %c0_i32 = arith.constant 0 : i32
    %c0_i32_0 = arith.constant 0 : i32
    %c0_i32_1 = arith.constant 0 : i32
    return %c0_i32, %c0_i32_0 : i32, i32
  }
  func.func @transform_9(%arg0: i32) -> (i32, i32) {
    %c0_i32 = arith.constant 0 : i32
    %c0_i32_0 = arith.constant 0 : i32
    return %arg0, %c0_i32 : i32, i32
  }
}

</mosaic_0001>

<bundles_post_ra>
// kernel: tpu_custom_call.1
= control target key start
LH: loop header
LB: loop body
LE: loop exit
PB: predicated region body
PF: predicated region fallthrough
CT: control target
= control target key end

     0   :  { %s1830_s0 = inlined_call_operand.hbm [shape: f32[16,16], index: 0, kind: input, shape index: {}]   ;;  %s1831_s1 = inlined_call_operand.hbm [shape: f32[16,128], index: 1, kind: input, shape index: {}]   ;;  %s1832_s2 = inlined_call_operand.vmem [shape: f32[1,128], index: 2, kind: input, shape index: {}]   ;;  %s1833_s3 = inlined_call_operand.hbm [shape: f32[128,128], index: 3, kind: input, shape index: {}]   ;;  %s1834_s4 = inlined_call_operand.vmem [shape: f32[1,128], index: 4, kind: input, shape index: {}]   ;;  %s1835_s5 = inlined_call_operand.hbm [shape: f32[128,256], index: 5, kind: input, shape index: {}]   ;;  %s1836_s6 = inlined_call_operand.vmem [shape: f32[1,256], index: 6, kind: input, shape index: {}]   ;;  %s1837_s7 = inlined_call_operand.hbm [shape: f32[256,128], index: 7, kind: input, shape index: {}]   ;;  %s1838_s8 = inlined_call_operand.vmem [shape: f32[1,128], index: 8, kind: input, shape index: {}]   ;;  %s1839_s9 = inlined_call_operand.hbm [shape: f32[16,128], index: 9, kind: output, shape index: {}]  }
   0x1   :  { %1846 = sst [smem:[#allocation16_spill]] %s1831_s1 }
   0x2   :  { %1847 = sst [smem:[#allocation17_spill]] %s1839_s9 }
   0x3   :  { %14 = vsyncpa [#allocation3], 0 }
   0x4   :  { %16 = vsyncpa [#allocation3 + $0x1], 0 }
   0x5   :  { %17 = vsyncpa [#allocation6], 0 }
   0x6   :  { %18 = vsyncpa [#allocation9], 0 }
   0x7   :  { %19 = vsyncpa [#allocation4], 0 }
   0x8   :  { %21 = vsyncpa [#allocation4 + $0x1], 0  ;;  %s1529_s30 = smov 0   ;;  %s1531_s10 = smov 0  }
   0x9   :  { %s1533_s11 = smov 0   ;;  %s1535_s12 = smov 0  }
   0xa LB: > { %s1466_s13 = smov [#allocation5]   ;;  %s1550_s15 = sadd.s32 4294967295, %s1464_s12   ;;  %s1464_s12 = sphi %s1535_s12, %s1871_s12   ;;  %s1460_s11 = sphi %s1533_s11, %s1870_s11   ;;  %s1456_s10 = sphi %s1531_s10, %s1869_s10   ;;  %s1452_s30 = sphi %s1529_s30, %s1868_s30  }
   0xb   : > { %s264_s14 = sshll.u32 %s1466_s13, 4  ;;  %p935_p0 = scmp.ge.s32.totalorder %s1464_s12, 1  ;;  %s1555_s14 = int_to_ptr.vmem [resolvable:$true] %s264_s14 }
   0xc   : > { %p1843_p1 = scmp.eq.s32.totalorder %s1550_s15, 0  ;;  %p252_p2 = scmp.lt.s32.totalorder %s1464_s12, 3 }
   0xd   : > { %s1467_s17 = smov [#allocation8]   ;;  %s1468_s20 = smov [#allocation7]  }
   0xe   : > { %p1557_p3 = pnand %p935_p0, %p252_p2  ;;  %s296_s18 = sshll.u32 %s1467_s17, 4  ;;  %s1570_s18 = int_to_ptr.vmem [resolvable:$true] %s296_s18 }
   0xf   : > { %s1572_s21 = sshll.u32 %s1468_s20, 4  ;;  %s1850_s1 = sld [smem:[#allocation16_spill]]  ;;  %s281_s21 = int_to_ptr.vmem [resolvable:$true] %s1572_s21 }
  0x10   : > { %s1848_s16 = scalar_select %p1557_p3, 1, 0 }
  0x11   : > { %p1166_p5 = pneg %p1557_p3 }
  0x13   : > { %p1566_p6 = pnand %p1166_p5, %p1843_p1 }
  0x15   : > { %s1248_s24 = scalar_lea.hbm %s1850_s1, 256  ;;  %p1582_p8 = pneg %p1566_p6 }
  0x16   : > { %p1249_p7 = scmp.ne.s32.totalorder %s1850_s1, %s1248_s24  ;;  %p1255_p11 = scmp.lt.u32.totalorder %s1248_s24, %s1850_s1 }
  0x18   : > { %p1251_p9 = pnand %p1582_p8, %p1249_p7 }
  0x1a   : > { %p1252_p10 = pneg %p1251_p9 }
  0x1c   : > { %p1257_p12 = pnand %p1255_p11, %p1252_p10 }
  0x1e   : > { %1260 = shalt.err (!%p1257_p12)
}
  0x1f   : > { %s1261_s13 = scalar_lea.vmem %s1555_s14, 256  ;;  %p1269_p5 = scmp.lt.s32.totalorder %s1555_s14, %s1555_s14 }
  0x20   : > { %p1262_p13 = scmp.ne.s32.totalorder %s1555_s14, %s1261_s13  ;;  %p1270_p4 = scmp.lt.s32.totalorder %s1261_s13, %s1261_s13 }
  0x22   : > { %p1264_p0 = pnand %p1262_p13, %p1582_p8  ;;  %p1271_p7 = por %p1270_p4, %p1269_p5 }
  0x24   : > { %p1265_p2 = pneg %p1264_p0 }
  0x26   : > { %p1272_p9 = pnand %p1271_p7, %p1265_p2 }
  0x28   : > { %1275 = shalt.err (!%p1272_p9)
}
  0x29   : > { %s1841_s17 = smov 128   ;;  %s1470_s20 = smov 8  }
  0x2a   : > { %1169 = dma.hbm_to_vmem [thread:$0]  (!%p1566_p6), %s1850_s1, 256, %s1555_s14, [#allocation6], %s1841_s17, %s1841_s17, %s1470_s20  }
  0x2b   : > { %s1276_s26 = scalar_lea.hbm %s1835_s5, 4096 }
  0x2c   : > { %p1277_p4 = scmp.ne.s32.totalorder %s1835_s5, %s1276_s26  ;;  %p1283_p12 = scmp.lt.u32.totalorder %s1276_s26, %s1835_s5 }
  0x2e   : > { %p1279_p10 = pnand %p1277_p4, %p1582_p8 }
  0x30   : > { %p1280_p11 = pneg %p1279_p10 }
  0x32   : > { %p1285_p13 = pnand %p1283_p12, %p1280_p11 }
  0x34   : > { %1288 = shalt.err (!%p1285_p13)
}
  0x35   : > { %s1289_s14 = scalar_lea.vmem %s1570_s18, 4096  ;;  %p1297_p7 = scmp.lt.s32.totalorder %s1570_s18, %s1570_s18 }
  0x36   : > { %p1290_p0 = scmp.ne.s32.totalorder %s1570_s18, %s1289_s14  ;;  %p1298_p9 = scmp.lt.s32.totalorder %s1289_s14, %s1289_s14 }
  0x38   : > { %p1292_p2 = pnand %p1290_p0, %p1582_p8  ;;  %p1299_p4 = por %p1298_p9, %p1297_p7 }
  0x3a   : > { %p1293_p5 = pneg %p1292_p2 }
  0x3c   : > { %p1300_p10 = pnand %p1299_p4, %p1293_p5 }
  0x3e   : > { %1303 = shalt.err (!%p1300_p10)
}
  0x3f   : > { %s1471_s22 = smov 256   ;;  %s1472_s9 = smov 16  }
  0x40   : > { %1175 = dma.hbm_to_vmem [thread:$0]  (!%p1566_p6), %s1835_s5, 4096, %s1570_s18, [#allocation9], %s1471_s22, %s1471_s22, %s1472_s9  }
  0x41   : > { %s1304_s28 = scalar_lea.hbm %s1833_s3, 2048 }
  0x42   : > { %p1305_p11 = scmp.ne.s32.totalorder %s1833_s3, %s1304_s28  ;;  %p1311_p0 = scmp.lt.u32.totalorder %s1304_s28, %s1833_s3 }
  0x44   : > { %p1307_p12 = pnand %p1305_p11, %p1582_p8 }
  0x46   : > { %p1308_p13 = pneg %p1307_p12 }
  0x48   : > { %p1313_p2 = pnand %p1311_p0, %p1308_p13 }
  0x4a   : > { %1316 = shalt.err (!%p1313_p2)
}
  0x4b   : > { %s1317_s23 = scalar_lea.vmem %s281_s21, 2048  ;;  %p1325_p4 = scmp.lt.s32.totalorder %s281_s21, %s281_s21 }
  0x4c   : > { %p1318_p5 = scmp.ne.s32.totalorder %s281_s21, %s1317_s23  ;;  %p1326_p10 = scmp.lt.s32.totalorder %s1317_s23, %s1317_s23 }
  0x4e   : > { %p1320_p7 = pnand %p1318_p5, %p1582_p8  ;;  %p1327_p1 = por %p1326_p10, %p1325_p4 }
  0x50   : > { %p1321_p9 = pneg %p1320_p7 }
  0x52   : > { %p1328_p3 = pnand %p1327_p1, %p1321_p9 }
  0x54   : > { %1331 = shalt.err (!%p1328_p3)
}
  0x55   : > { %s1852_s18 = smov 128   ;;  %s1473_s9 = smov [#allocation10]  }
  0x56   : > { %1172 = dma.hbm_to_vmem [thread:$0]  (!%p1566_p6), %s1833_s3, 2048, %s281_s21, [#allocation6], %s1852_s18, %s1852_s18, %s1470_s20  }
  0x57   : > { %s312_s24 = sshll.u32 %s1473_s9, 4  ;;  %s1332_s28 = scalar_lea.hbm %s1837_s7, 4096  ;;  %s313_s24 = int_to_ptr.vmem [resolvable:$true] %s312_s24 }
  0x58   : > { %p1333_p1 = scmp.ne.s32.totalorder %s1837_s7, %s1332_s28  ;;  %p1339_p12 = scmp.lt.u32.totalorder %s1332_s28, %s1837_s7 }
  0x5a   : > { %p1335_p3 = pnand %p1333_p1, %p1582_p8 }
  0x5c   : > { %p1336_p11 = pneg %p1335_p3 }
  0x5e   : > { %p1341_p13 = pnand %p1339_p12, %p1336_p11 }
  0x60   : > { %1344 = shalt.err (!%p1341_p13)
}
  0x61   : > { %s1345_s21 = scalar_lea.vmem %s313_s24, 4096  ;;  %p1353_p7 = scmp.lt.s32.totalorder %s313_s24, %s313_s24 }
  0x62   : > { %p1346_p0 = scmp.ne.s32.totalorder %s313_s24, %s1345_s21  ;;  %p1354_p9 = scmp.lt.s32.totalorder %s1345_s21, %s1345_s21 }
  0x64   : > { %p1348_p2 = pnand %p1346_p0, %p1582_p8  ;;  %p1355_p4 = por %p1354_p9, %p1353_p7 }
  0x66   : > { %p1349_p5 = pneg %p1348_p2 }
  0x68   : > { %p1356_p10 = pnand %p1355_p4, %p1349_p5 }
  0x6a   : > { %1359 = shalt.err (!%p1356_p10)
}
  0x6b   : > { %1178 = dma.hbm_to_vmem [thread:$0]  (!%p1566_p6), %s1837_s7, 4096, %s313_s24, [#allocation9], %s1852_s18, %s1852_s18, %s1470_s20  }
  0x6c   : > { %s934_s19 = sadd.s32 4294967294, %s1464_s12   ;;  %s1674_s27 = sadd.s32 1, %s1464_s12  }
  0x6d   : > { %s31_s9 = ssub.s32 %s1464_s12, %s1674_s27  ;;  %s34_s25 = sadd.s32 1, %s1460_s11 }
  0x6e   : > { %p32_p8 = scmp.eq.s32.totalorder %s31_s9, 0  ;;  %p41_p1 = scmp.ne.s32.totalorder %s1460_s11, %s1456_s10 }
  0x6f   : > { %p42_p3 = scmp.eq.s32.totalorder %s1464_s12, 0  ;;  %p47_p11 = scmp.ne.s32.totalorder %s1456_s10, %s1452_s30 }
  0x70   : > { %s1685_s26 = scalar_select %p32_p8, %s1460_s11, %s34_s25  }
  0x71   : > { %p1687_p12 = por %p42_p3, %p41_p1  ;;  %p1854_p13 = scmp.eq.s32.totalorder %s1550_s15, 0 }
  0x72   : > { %p239_p0 = scmp.eq.s32.totalorder %s1550_s15, 1  ;;  %p245_p2 = scmp.eq.s32.totalorder %s934_s19, 1 }
  0x73   : > { %p1693_p6 = por %p1854_p13, %p47_p11  ;;  %p1191_p5 = scmp.lt.s32.totalorder %s1464_s12, 2 }
  0x74   : > { %s329_s18 = sand.u32 1, %s1460_s11   ;;  %p1700_p7 = por %p239_p0, %p41_p1 }
  0x75   : > { %p1704_p9 = por %p245_p2, %p47_p11  ;;  %s941_s13 = sshll.u32 %s329_s18, 3 }
  0x76   : > { %s1856_s24 = scalar_select %p1700_p7, 1, 0 }
  0x77   : > { %s1857_s29 = scalar_select %p1704_p9, 1, 0 }
  0x78   : > { %s942_s14 = sshll.u32 %s1464_s12, 7  ;;  %s333_s22 = scalar_lea.vmem [#allocation2], %s941_s13 }
  0x79   : > { %s1712_s17 = scalar_lea.hbm %s1830_s0, %s942_s14  ;;  %s340_s19 = sshll.u32 %s333_s22, 4  ;;  %s1714_s19 = int_to_ptr.vmem [resolvable:$true] %s340_s19 }
  0x7a   : > { %p1718_p4 = pnand %p1191_p5, %p1687_p12  ;;  %s330_s25 = scalar_lea.sflag [#allocation3], %s329_s18 }
  0x7b   : > { %s1360_s1 = scalar_lea.hbm %s1712_s17, 128  ;;  %s1365_s23 = scalar_lea.hbm %s1830_s0, 256 }
  0x7c   : > { %p1361_p10 = scmp.ne.s32.totalorder %s1712_s17, %s1360_s1  ;;  %p1362_p8 = pneg %p1718_p4 }
  0x7d   : > { %p1366_p11 = scmp.lt.u32.totalorder %s1712_s17, %s1830_s0  ;;  %p1367_p12 = scmp.lt.u32.totalorder %s1365_s23, %s1360_s1 }
  0x7e   : > { %p1363_p1 = pnand %p1362_p8, %p1361_p10  ;;  %p1369_p0 = scmp.lt.u32.totalorder %s1360_s1, %s1712_s17 }
  0x7f   : > { %p1368_p13 = por %p1367_p12, %p1366_p11 }
  0x80   : > { %p1364_p3 = pneg %p1363_p1 }
  0x81   : > { %p1370_p2 = por %p1369_p0, %p1368_p13 }
  0x83   : > { %p1371_p5 = pnand %p1370_p2, %p1364_p3 }
  0x85   : > { %1374 = shalt.err (!%p1371_p5)
}
  0x86   : > { %s1375_s18 = scalar_lea.vmem %s1714_s19, 128  ;;  %s1474_s22 = smov [#allocation2]  }
  0x87   : > { %p1376_p10 = scmp.ne.s32.totalorder %s1714_s19, %s1375_s18  ;;  %s1380_s13 = sshll.u32 %s1474_s22, 4  ;;  %s1381_s13 = int_to_ptr.vmem [resolvable:$false] %s1380_s13 }
  0x88   : > { %s1382_s14 = scalar_lea.vmem %s1381_s13, 256  ;;  %p1383_p7 = scmp.lt.s32.totalorder %s1714_s19, %s1381_s13 }
  0x89   : > { %p1378_p1 = pnand %p1376_p10, %p1362_p8  ;;  %p1384_p11 = scmp.lt.s32.totalorder %s1382_s14, %s1375_s18 }
  0x8b   : > { %p1379_p9 = pneg %p1378_p1  ;;  %p1385_p12 = por %p1384_p11, %p1383_p7 }
  0x8d   : > { %p1386_p13 = pnand %p1385_p12, %p1379_p9 }
  0x8f   : > { %1389 = shalt.err (!%p1386_p13)
}
  0x90   : > { %1182 = dma.hbm_to_vmem [thread:$0]  (!%p1718_p4), %s1712_s17, 128, %s1714_s19, %s330_s25  }
  0x91   : > { %p1859_p3 = scmp.ne.s32.totalorder %s1848_s16, 0 }
  0x92   : > { %s1750_s1 = sand.u32 (!%p1859_p3), 1, %s1456_s10  }
  0x93   : > { %349 = sbr.rel (%p1859_p3) target bundleno = 1075 (0x433), region = 56  ;;  %s944_s23 = sshll.u32 (!%p1859_p3), %s1750_s1, 3 }
  0x94   : > { %s352_s28 = scalar_lea.sflag (!%p1859_p3), [#allocation3], %s1750_s1  ;;  %s355_s21 = scalar_lea.vmem (!%p1859_p3), [#allocation2], %s944_s23 }
  0x9a   : > { %1435 = dma.done.wait (%p1693_p6), %s352_s28, 128  }
  0x9b   : > { %1437 = vsyncadd (%p1693_p6), %s352_s28, 4294967168  ;;  %p1860_p7 = scmp.eq.s32.totalorder %s1550_s15, 0 }
  0x9d   : > { %1439 = dma.done.wait (%p1860_p7), [#allocation6], 2304   ;;  %p1861_p9 = pmov %p1860_p7 }
  0x9e   : > { %p1862_p4 = pmov %p1860_p7 }
  0x9f   : > { %1441 = vsyncadd (%p1861_p9), [#allocation6], 4294964992 }
  0xa0   : > { %1443 = dma.done.wait (%p1862_p4), [#allocation9], 8192   ;;  %p1863_p8 = pmov %p1862_p4 }
  0xa1   : > { %v1475_v0 = vmov 0.0|0.0   ;;  %vm1476_vm0 = vmmov 0   ;;  %v1477_v1 = vmov 0.0   ;;  %v407_v2 = vld [vmem:[#allocation5] sm:$0xff]  ;;  %v408_v3 = vld [vmem:[#allocation5 + $0x8] sm:$0xff]  ;;  %v491_v5 = vld [vmem:[#allocation7] sm:$0xff] }
  0xa2   : > { %1445 = vsyncadd (%p1863_p8), [#allocation9], 4294959104  ;;  %1055 = vmatprep.subr.bf16.mxu0 %v1475_v0  ;;  %1017 = vmatprep.mubr.msk.f32.mxu0 %vm1476_vm0, %v1477_v1  ;;  %v1056_v4 = vpack.c.bf16 %v408_v3, %v407_v2  ;;  %v492_v6 = vld [vmem:[#allocation7 + $0x8] sm:$0xff]  ;;  %v493_v7 = vld [vmem:[#allocation7 + $0x10] sm:$0xff]  ;;  %vm416_vm1 = vcmask 130048   ;;  %s955_s13 = sshll.u32 %s1550_s15, 7 }
  0xa3   : > { %1058 = vmatprep.subr.bf16.mxu1 %v1475_v0  ;;  %1052 = vmatprep.mubr.msk.f32.mxu1 %vm1476_vm0, %v1477_v1  ;;  %v1059_v8 = vpack.c.bf16 %v492_v6, %v491_v5  ;;  %v494_v9 = vld [vmem:[#allocation7 + $0x18] sm:$0xff]  ;;  %v406_v10 = vld [vmem:[%s355_s21] sm:$0xff]  ;;  %v497_v15 = vld [vmem:[#allocation7 + $0x30] sm:$0xff]  ;;  %s405_s14 = scalar_lea.vmem [#allocation11], %s944_s23  ;;  %s1864_s20 = sld [smem:[#allocation17_spill]] }
  0xa4   : > { %1057 = vmatpush3.bf16.msra.mxu0 %v1056_v4  ;;  %v1062_v11 = vpack.c.bf16 %v494_v9, %v493_v7  ;;  %v495_v12 = vld [vmem:[#allocation7 + $0x20] sm:$0xff]  ;;  %v496_v13 = vld [vmem:[#allocation7 + $0x28] sm:$0xff]  ;;  %v498_v16 = vld [vmem:[#allocation7 + $0x38] sm:$0xff]  ;;  %s826_s28 = sshll.u32 %s405_s14, 4  ;;  %s813_s19 = scalar_lea.sflag [#allocation4], %s1750_s1  ;;  %s1788_s28 = int_to_ptr.vmem [resolvable:$true] %s826_s28 }
  0xa5   : > { %1060 = vmatpush3.bf16.msra.mxu1 %v1059_v8  ;;  %v1065_v14 = vpack.c.bf16 %v496_v13, %v495_v12  ;;  %v1068_v17 = vpack.c.bf16 %v498_v16, %v497_v15  ;;  %v499_v18 = vld [vmem:[#allocation7 + $0x40] sm:$0xff]  ;;  %v500_v19 = vld [vmem:[#allocation7 + $0x48] sm:$0xff]  ;;  %v501_v21 = vld [vmem:[#allocation7 + $0x50] sm:$0xff]  ;;  %s1390_s9 = scalar_lea.vmem %s1788_s28, 128  ;;  %p1865_p0 = scmp.ne.s32.totalorder %s1856_s24, 0 }
  0xa6   : > { %1061 = vmatprep.subr.bf16.mxu1 %v1475_v0  ;;  %v1071_v20 = vpack.c.bf16 %v500_v19, %v499_v18  ;;  %v502_v22 = vld [vmem:[#allocation7 + $0x58] sm:$0xff]  ;;  %v503_v24 = vld [vmem:[#allocation7 + $0x60] sm:$0xff]  ;;  %v504_v25 = vld [vmem:[#allocation7 + $0x68] sm:$0xff]  ;;  %p1391_p6 = scmp.ne.s32.totalorder %s1788_s28, %s1390_s9  ;;  %s1478_s15 = smov [#allocation11]  }
  0xa7   : > { %1018 = vmatmul.mubr.msk.f32.vlgmr.msra.gmra.mrb[0].mxu0 %vm416_vm1, %v406_v10  ;;  %v1074_v23 = vpack.c.bf16 %v502_v22, %v501_v21  ;;  %v1077_v26 = vpack.c.bf16 %v504_v25, %v503_v24  ;;  %v505_v27 = vld [vmem:[#allocation7 + $0x70] sm:$0xff]  ;;  %v506_v28 = vld [vmem:[#allocation7 + $0x78] sm:$0xff]  ;;  %v586_v30 = vld [vmem:[#allocation8 + $0x8] sm:$0xff]  ;;  %s1394_s23 = sshll.u32 %s1478_s15, 4  ;;  %s1395_s23 = int_to_ptr.vmem [resolvable:$false] %s1394_s23 }
  0xa8   : > { %693 = vmatprep.mubr.f32.mxu0 %v1477_v1  ;;  %v1080_v29 = vpack.c.bf16 %v506_v28, %v505_v27  ;;  %v588_v31 = vld [vmem:[#allocation8 + $0x18] sm:$0xff]  ;;  %v585_v32 = vld [vmem:[#allocation8] sm:$0xff]  ;;  %v587_v34 = vld [vmem:[#allocation8 + $0x10] sm:$0xff]  ;;  %p1392_p2 = pnand %p1391_p6, %p1865_p0  ;;  %s1396_s25 = scalar_lea.vmem %s1395_s23, 256 }
  0xa9   : > { %1063 = vmatpush3.bf16.msra.mxu1 %v1062_v11  ;;  %v1082_v33 = vpack.c.bf16 %v588_v31, %v586_v30  ;;  %v590_v35 = vld [vmem:[#allocation8 + $0x28] sm:$0xff]  ;;  %v592_v36 = vld [vmem:[#allocation8 + $0x38] sm:$0xff]  ;;  %v1084_v37 = vpack.c.bf16 %v587_v34, %v585_v32  ;;  %v589_v39 = vld [vmem:[#allocation8 + $0x20] sm:$0xff]  ;;  %s1786_s17 = scalar_lea.hbm %s1864_s20, %s955_s13  ;;  %p1397_p10 = scmp.lt.s32.totalorder %s1788_s28, %s1395_s23 }
  0xaa   : > { %1064 = vmatprep.subr.bf16.mxu1 %v1475_v0  ;;  %v1086_v38 = vpack.c.bf16 %v592_v36, %v590_v35  ;;  %v591_v40 = vld [vmem:[#allocation8 + $0x30] sm:$0xff]  ;;  %v594_v41 = vld [vmem:[#allocation8 + $0x48] sm:$0xff]  ;;  %v596_v42 = vld [vmem:[#allocation8 + $0x58] sm:$0xff]  ;;  %p1393_p5 = pneg %p1392_p2  ;;  %p1398_p1 = scmp.lt.s32.totalorder %s1396_s25, %s1390_s9 }
  0xab   : > { %1083 = vmatprep.subr.bf16.mxu0 %v1082_v33  ;;  %v1088_v43 = vpack.c.bf16 %v591_v40, %v589_v39  ;;  %v1090_v44 = vpack.c.bf16 %v596_v42, %v594_v41  ;;  %v593_v45 = vld [vmem:[#allocation8 + $0x40] sm:$0xff]  ;;  %v595_v46 = vld [vmem:[#allocation8 + $0x50] sm:$0xff]  ;;  %v598_v47 = vld [vmem:[#allocation8 + $0x68] sm:$0xff] }
  0xac   : > { %1085 = vmatpush1.bf16.msra.mxu0 %v1084_v37  ;;  %v600_v48 = vld [vmem:[#allocation8 + $0x78] sm:$0xff]  ;;  %v1092_v49 = vpack.c.bf16 %v595_v46, %v593_v45  ;;  %v597_v51 = vld [vmem:[#allocation8 + $0x60] sm:$0xff]  ;;  %v599_v52 = vld [vmem:[#allocation8 + $0x70] sm:$0xff]  ;;  %p1399_p11 = por %p1398_p1, %p1397_p10 }
  0xad   : > { %1066 = vmatpush3.bf16.msra.mxu1 %v1065_v14  ;;  %1087 = vmatprep.subr.bf16.mxu0 %v1086_v38  ;;  %v1094_v50 = vpack.c.bf16 %v600_v48, %v598_v47  ;;  %v602_v53 = vld [vmem:[#allocation8 + $0x88] sm:$0xff]  ;;  %v604_v54 = vld [vmem:[#allocation8 + $0x98] sm:$0xff]  ;;  %v1096_v55 = vpack.c.bf16 %v599_v52, %v597_v51  ;;  %v601_v57 = vld [vmem:[#allocation8 + $0x80] sm:$0xff] }
  0xae   : > { %1067 = vmatprep.subr.bf16.mxu1 %v1475_v0  ;;  %v1098_v56 = vpack.c.bf16 %v604_v54, %v602_v53  ;;  %v603_v58 = vld [vmem:[#allocation8 + $0x90] sm:$0xff]  ;;  %v950_v60 = vld [vmem:[%s1832_s2] ss:$0 sm:$0xff]  ;;  %v606_v1 = vld [vmem:[#allocation8 + $0xa8] sm:$0xff]  ;;  %p1400_p12 = pnand %p1399_p11, %p1393_p5 }
  0xaf   : > { %v1100_v59 = vpack.c.bf16 %v603_v58, %v601_v57  ;;  %v608_v2 = vld [vmem:[#allocation8 + $0xb8] sm:$0xff]  ;;  %v605_v4 = vld [vmem:[#allocation8 + $0xa0] sm:$0xff]  ;;  %v607_v5 = vld [vmem:[#allocation8 + $0xb0] sm:$0xff] }
  0xb0   : > { %1089 = vmatpush1.bf16.msra.mxu0 %v1088_v43  ;;  %v1102_v3 = vpack.c.bf16 %v608_v2, %v606_v1  ;;  %v1104_v6 = vpack.c.bf16 %v607_v5, %v605_v4  ;;  %v610_v7 = vld [vmem:[#allocation8 + $0xc8] sm:$0xff]  ;;  %v612_v8 = vld [vmem:[#allocation8 + $0xd8] sm:$0xff]  ;;  %v609_v9 = vld [vmem:[#allocation8 + $0xc0] sm:$0xff] }
  0xb1   : > { %1069 = vmatpush3.bf16.msra.mxu1 %v1068_v17  ;;  %1091 = vmatprep.subr.bf16.mxu0 %v1090_v44  ;;  %v1106_v10 = vpack.c.bf16 %v612_v8, %v610_v7  ;;  %v611_v11 = vld [vmem:[#allocation8 + $0xd0] sm:$0xff]  ;;  %v614_v12 = vld [vmem:[#allocation8 + $0xe8] sm:$0xff]  ;;  %v616_v13 = vld [vmem:[#allocation8 + $0xf8] sm:$0xff]  ;;  %v619_v8 = vlaneseq }
  0xb2   : > { %1070 = vmatprep.subr.bf16.mxu1 %v1475_v0  ;;  %v1108_v14 = vpack.c.bf16 %v611_v11, %v609_v9  ;;  %v1110_v15 = vpack.c.bf16 %v616_v13, %v614_v12  ;;  %v613_v16 = vld [vmem:[#allocation8 + $0xe0] sm:$0xff]  ;;  %v615_v17 = vld [vmem:[#allocation8 + $0xf0] sm:$0xff]  ;;  %v721_v25 = vld [vmem:[#allocation10 + $0x98] sm:$0xff] }
  0xb3   : > { %v1112_v18 = vpack.c.bf16 %v615_v17, %v613_v16  ;;  %v718_v19 = vld [vmem:[#allocation10 + $0x80] sm:$0xff]  ;;  %v720_v24 = vld [vmem:[#allocation10 + $0x90] sm:$0xff]  ;;  %v723_v31 = vld [vmem:[#allocation10 + $0xa8] sm:$0xff]  ;;  %v620_v9 = vshrl.u32 %v619_v8, 7 }
  0xb4   : > { %1093 = vmatpush1.bf16.msra.mxu0 %v1092_v49  ;;  %v702_v21 = vld [vmem:[#allocation10] sm:$0xff]  ;;  %v1118_v27 = vpack.c.bf16 %v721_v25, %v720_v24  ;;  %v704_v28 = vld [vmem:[#allocation10 + $0x10] sm:$0xff]  ;;  %v707_v35 = vld [vmem:[#allocation10 + $0x28] sm:$0xff] }
  0xb5   : > { %1072 = vmatpush3.bf16.msra.mxu1 %v1071_v20  ;;  %1095 = vmatprep.subr.bf16.mxu0 %v1094_v50  ;;  %v719_v20 = vld [vmem:[#allocation10 + $0x88] sm:$0xff]  ;;  %v722_v30 = vld [vmem:[#allocation10 + $0xa0] sm:$0xff]  ;;  %v724_v36 = vld [vmem:[#allocation10 + $0xb0] sm:$0xff]  ;;  %v625_v12 = vsub.s32 1, %v620_v9 }
  0xb6   : > { %1073 = vmatprep.subr.bf16.mxu1 %v1475_v0  ;;  %v1114_v22 = vpack.c.bf16 %v719_v20, %v718_v19  ;;  %v1122_v33 = vpack.c.bf16 %v723_v31, %v722_v30  ;;  %v706_v34 = vld [vmem:[#allocation10 + $0x20] sm:$0xff]  ;;  %v725_v37 = vld [vmem:[#allocation10 + $0xb8] sm:$0xff]  ;;  %v708_v40 = vld [vmem:[#allocation10 + $0x30] sm:$0xff] }
  0xb7   : > { %v1124_v38 = vpack.c.bf16 %v707_v35, %v706_v34  ;;  %v1126_v39 = vpack.c.bf16 %v725_v37, %v724_v36  ;;  %v709_v41 = vld [vmem:[#allocation10 + $0x38] sm:$0xff]  ;;  %v952_v43 = vld [vmem:[%s1834_s4] ss:$0 sm:$0xff]  ;;  %v727_v49 = vld [vmem:[#allocation10 + $0xc8] sm:$0xff] }
  0xb8   : > { %1097 = vmatpush1.bf16.msra.mxu0 %v1096_v55  ;;  %v1128_v42 = vpack.c.bf16 %v709_v41, %v708_v40  ;;  %v726_v48 = vld [vmem:[#allocation10 + $0xc0] sm:$0xff]  ;;  %v711_v52 = vld [vmem:[#allocation10 + $0x48] sm:$0xff]  ;;  %v728_v54 = vld [vmem:[#allocation10 + $0xd0] sm:$0xff] }
  0xb9   : > { %1075 = vmatpush3.bf16.msra.mxu1 %v1074_v23  ;;  %1099 = vmatprep.subr.bf16.mxu0 %v1098_v56  ;;  %v703_v23 = vld [vmem:[#allocation10 + $0x8] sm:$0xff]  ;;  %v1130_v50 = vpack.c.bf16 %v727_v49, %v726_v48  ;;  %v710_v51 = vld [vmem:[#allocation10 + $0x40] sm:$0xff]  ;;  %v729_v55 = vld [vmem:[#allocation10 + $0xd8] sm:$0xff] }
  0xba   : > { %1076 = vmatprep.subr.bf16.mxu1 %v1475_v0  ;;  %v1132_v53 = vpack.c.bf16 %v711_v52, %v710_v51  ;;  %v1134_v56 = vpack.c.bf16 %v729_v55, %v728_v54  ;;  %v712_v57 = vld [vmem:[#allocation10 + $0x50] sm:$0xff]  ;;  %v713_v58 = vld [vmem:[#allocation10 + $0x58] sm:$0xff]  ;;  %v617_v11 = vld [vmem:[%s1836_s6] sm:$0x3] }
  0xbb   : > { %v732_v1 = vld [vmem:[#allocation10 + $0xf0] sm:$0xff]  ;;  %v733_v2 = vld [vmem:[#allocation10 + $0xf8] sm:$0xff] }
  0xbc   : > { %1101 = vmatpush1.bf16.msra.mxu0 %v1100_v59  ;;  %v1136_v59 = vpack.c.bf16 %v713_v58, %v712_v57  ;;  %v1142_v4 = vpack.c.bf16 %v733_v2, %v732_v1  ;;  %v716_v5 = vld [vmem:[#allocation10 + $0x70] sm:$0xff] }
  0xbd   : > { %1078 = vmatpush3.bf16.msra.mxu1 %v1077_v26  ;;  %1103 = vmatprep.subr.bf16.mxu0 %v1102_v3  ;;  %v1116_v26 = vpack.c.bf16 %v703_v23, %v702_v21 }
  0xbe   : > { %1079 = vmatprep.subr.bf16.mxu1 %v1475_v0 }
  0xc0   : > { %1105 = vmatpush1.bf16.msra.mxu0 %v1104_v6  ;;  %v717_v6 = vld [vmem:[#allocation10 + $0x78] sm:$0xff] }
  0xc1   : > { %1081 = vmatpush3.bf16.msra.mxu1 %v1080_v29  ;;  %1107 = vmatprep.subr.bf16.mxu0 %v1106_v10  ;;  %v705_v29 = vld [vmem:[#allocation10 + $0x18] sm:$0xff]  ;;  %v1144_v7 = vpack.c.bf16 %v717_v6, %v716_v5  ;;  %v621_v10 = vsub.s32 0, %v620_v9 }
  0xc2   : > { %1115 = vmatprep.subr.bf16.mxu1 %v1114_v22  ;;  %v1120_v32 = vpack.c.bf16 %v705_v29, %v704_v28  ;;  %v953_v22 = vld [vmem:[%s1838_s8] ss:$0 sm:$0xff] }
  0xc3   : > { %v622_v13 = vrot.slane %v617_v11, %v621_v10 }
  0xc4   : > { %1109 = vmatpush1.bf16.msra.mxu0 %v1108_v14  ;;  %v626_v14 = vrot.slane %v617_v11, %v625_v12 }
  0xc5   : > { %1111 = vmatprep.subr.bf16.mxu0 %v1110_v15 }
  0xc8   : > { %1113 = vmatpush1.bf16.msra.mxu0 %v1112_v18 }
 0x17a   : > { %v486_v61 = vpop.f32.mrb[0].mxu0 }
 0x17b   : > { %v487_v62 = vadd.f32 %v950_v60, %v486_v61  ;;  %v1019_v63 = vpop.f32.mrb[1].mxu0  ;;  %v730_v60 = vld [vmem:[#allocation10 + $0xe0] sm:$0xff]  ;;  %v731_v61 = vld [vmem:[#allocation10 + $0xe8] sm:$0xff] }
 0x17c   : > { %v1138_v63 = vpack.c.bf16 %v731_v61, %v730_v60 }
 0x17d   : > { %1240 = vtanh.f32 %v487_v62  ;;  %v714_v62 = vld [vmem:[#allocation10 + $0x60] sm:$0xff] }
 0x187   : > { %v1241_v0 = vpop.eup %1240 }
 0x188   : > { %1053 = vmatmul.mubr.f32.vlgmr.msra.gmra.mrb[0].mxu1 %v1241_v0  ;;  %v715_v0 = vld [vmem:[#allocation10 + $0x68] sm:$0xff] }
 0x189   : > { %1117 = vmatpush3.bf16.msra.mxu1 %v1116_v26  ;;  %v1140_v3 = vpack.c.bf16 %v715_v0, %v714_v62 }
 0x18a   : > { %1119 = vmatprep.subr.bf16.mxu1 %v1118_v27 }
 0x18d   : > { %1121 = vmatpush3.bf16.msra.mxu1 %v1120_v32 }
 0x18e   : > { %1123 = vmatprep.subr.bf16.mxu1 %v1122_v33 }
 0x191   : > { %1125 = vmatpush3.bf16.msra.mxu1 %v1124_v38 }
 0x192   : > { %1127 = vmatprep.subr.bf16.mxu1 %v1126_v39 }
 0x195   : > { %1129 = vmatpush3.bf16.msra.mxu1 %v1128_v42 }
 0x196   : > { %1131 = vmatprep.subr.bf16.mxu1 %v1130_v50 }
 0x199   : > { %1133 = vmatpush3.bf16.msra.mxu1 %v1132_v53 }
 0x19a   : > { %1135 = vmatprep.subr.bf16.mxu1 %v1134_v56 }
 0x19d   : > { %1137 = vmatpush3.bf16.msra.mxu1 %v1136_v59 }
 0x19e   : > { %1139 = vmatprep.subr.bf16.mxu1 %v1138_v63 }
 0x1a1   : > { %1141 = vmatpush3.bf16.msra.mxu1 %v1140_v3 }
 0x1a2   : > { %1143 = vmatprep.subr.bf16.mxu1 %v1142_v4 }
 0x1a5   : > { %1145 = vmatpush3.bf16.msra.mxu1 %v1144_v7 }
 0x25b   : > { %v580_v44 = vpop.f32.mrb[0].mxu1 }
 0x25c   : > { %v581_v45 = vadd.f32 %v952_v43, %v580_v44  ;;  %v1054_v46 = vpop.f32.mrb[1].mxu1 }
 0x25e   : > { %1242 = vtanh.f32 %v581_v45 }
 0x268   : > { %v1243_v47 = vpop.eup %1242 }
 0x269   : > { %694 = vmatmul.mubr.f32.vlgmr.msra.gmra.mrb[2].mxu0 %v1243_v47 }
 0x33c   : > { %v695_v15 = vpop.f32.mrb[2].mxu0 }
 0x33d   : > { %v696_v16 = vadd.f32 %v695_v15, %v622_v13  ;;  %v697_v17 = vpop.f32.mrb[3].mxu0 }
 0x33e   : > { %v698_v18 = vadd.f32 %v697_v17, %v626_v14 }
 0x340   : > { %1244 = vtanh.f32 %v698_v18 }
 0x341   : > { %1246 = vtanh.f32 %v696_v16 }
 0x34a   : > { %v1245_v19 = vpop.eup %1244 }
 0x34b   : > { %v1247_v20 = vpop.eup %1246  ;;  %805 = vmatprep.mubr.f32.mxu1 %v1245_v19 }
 0x34c   : > { %806 = vmatmul.mubr.f32.vlgmr.msra.gmra.mrb[2].mxu1 %v1247_v20 }
 0x41f   : > { %v1010_v21 = vpop.f32.mrb[2].mxu1 }
 0x420   : > { %v1011_v23 = vpop.f32.mrb[3].mxu1 }
 0x421   : > { %v1012_v24 = vadd.f32 %v1011_v23, %v1010_v21 }
 0x423   : > { %v808_v25 = vadd.f32 %v1012_v24, %v953_v22 }
 0x425   : > { %811 = vst [vmem:[%s405_s14] sm:$0xff] %v808_v25 }
 0x426   : > { %1403 = shalt.err (!%p1400_p12)
}
 0x427   : > { %s1404_s1 = scalar_lea.hbm %s1786_s17, 128  ;;  %s1408_s13 = scalar_lea.hbm %s1864_s20, 256 }
 0x428   : > { %p1405_p13 = scmp.ne.s32.totalorder %s1786_s17, %s1404_s1  ;;  %p1409_p9 = scmp.lt.u32.totalorder %s1786_s17, %s1864_s20 }
 0x429   : > { %p1410_p4 = scmp.lt.u32.totalorder %s1408_s13, %s1404_s1  ;;  %p1412_p6 = scmp.lt.u32.totalorder %s1404_s1, %s1786_s17 }
 0x42a   : > { %p1406_p3 = pnand %p1405_p13, %p1865_p0 }
 0x42b   : > { %p1411_p8 = por %p1410_p4, %p1409_p9 }
 0x42c   : > { %p1407_p7 = pneg %p1406_p3 }
 0x42d   : > { %p1413_p2 = por %p1412_p6, %p1411_p8 }
 0x42f   : > { %p1414_p5 = pnand %p1413_p2, %p1407_p7 }
 0x431   : > { %1417 = shalt.err (!%p1414_p5)
}
 0x432   : > { %1164 = dma.vmem_to_hbm [thread:$0]  (%p1865_p0), %s1788_s28, 128, %s1786_s17, %s813_s19  }
 0x433 PF: > { %s838_s16 = sand.u32 1, %s1452_s30   ;;  %p1866_p10 = scmp.ne.s32.totalorder %s1857_s29, 0 }
 0x434   : > { %p1867_p1 = scmp.ge.s32.totalorder %s1464_s12, 2  ;;  %s839_s9 = scalar_lea.sflag [#allocation4], %s838_s16 }
 0x436   : > { %p1184_p11 = pnand %p1867_p1, %p1866_p10 }
 0x438   : > { %1447 = dma.done.wait (!%p1184_p11), %s839_s9, 128  }
 0x439   : > { %1449 = vsyncadd (!%p1184_p11), %s839_s9, 4294967168  ;;  %p24_p12 = scmp.ge.s32.totalorder %s1674_s27, 4   ;;  %s1868_s30 = smov %s1456_s10 }
 0x43a   : > { %s1869_s10 = smov %s1460_s11  ;;  %s1870_s11 = smov %s1685_s26 }
 0x43b   : > { %s1871_s12 = smov %s1674_s27  ;;  %26 = sbr.rel (!%p24_p12) target bundleno = 10 (0xa), region = 117 }
 0x442   :  { %844 = vsyncpa [#allocation3], 1 }
 0x443   :  { %846 = vsyncpa [#allocation3 + $0x1], 1 }
 0x444   :  { %847 = vsyncpa [#allocation6], 1 }
 0x445   :  { %848 = vsyncpa [#allocation9], 1 }
 0x446   :  { %849 = vsyncpa [#allocation4], 1 }
 0x447   :  { %851 = vsyncpa [#allocation4 + $0x1], 1 }

</bundles_post_ra>
